<compile_context>
chip_gen: v6e
topology: v6e:2x2x1
jax: 0.10.0
libtpu: 0.0.40
codegen_flags: <defaults>
</compile_context>

<pallas_src>
import functools

import jax
import jax.numpy as jnp
from jax import lax
from jax.experimental import pallas as pl
from jax.experimental.pallas import tpu as pltpu

NUM_LANDMARKS = 68
NUM_BLENDSHAPES = 52
LM_DIM = NUM_LANDMARKS * 2  # 136

DEFAULT_TILE_B = 4096  # rows per grid step (multiple of 8; ~1.7 MB of pred+tgt per tile)


def _landmark_loss_kernel(pred_ref, tgt_ref, wt_ref, out_ref, acc_ref, *,
                          true_b, tile_b, tiles_per_part, inv_n):
    # pred_ref / tgt_ref : (TB, 52)   VMEM   (current batch tile)
    # wt_ref             : (52, 136)  VMEM   (W.T, resident across the grid)
    # out_ref            : (1, 1)     SMEM   (this partial's scalar slot)
    # acc_ref            : (1, 136)   VMEM f32 (per-core partial row-sum accumulator)
    c = pl.program_id(0)  # partial-sum slot (TensorCore on v7x)
    t = pl.program_id(1)  # batch tile within this partial

    @pl.when(t == 0)
    def _init():
        acc_ref[...] = jnp.zeros_like(acc_ref)

    # Global (unclamped) row ids of this tile -> mask remainder / phantom rows.
    row0 = (c * tiles_per_part + t) * tile_b
    rows = row0 + lax.broadcasted_iota(jnp.int32, (tile_b, 1), 0)
    valid = rows < true_b

    # (pred - target) @ W.T — linearity lets us do a single MXU matmul.
    diff = pred_ref[...].astype(jnp.float32) - tgt_ref[...].astype(jnp.float32)
    # Mask BEFORE the matmul: boundary-block rows contain unspecified data and a
    # select (not a multiply-by-zero) is the only safe way to drop them.
    diff = jnp.where(valid, diff, jnp.float32(0.0))

    lm_diff = jnp.dot(diff, wt_ref[...].astype(jnp.float32),
                      preferred_element_type=jnp.float32)  # (TB, 136) on the MXU

    # Per-tile in-register reduction over rows into a tiny vector accumulator:
    # no full (TB,136) VMEM read-modify-write per step (frees the vst slot).
    acc_ref[...] += jnp.sum(lm_diff * lm_diff, axis=0, keepdims=True)

    @pl.when(t == pl.num_programs(1) - 1)
    def _finalize():
        out_ref[0, 0] = jnp.sum(acc_ref[...]) * jnp.float32(inv_n)


def landmark_consistency_loss(pred_blendshapes, target_blendshapes, weights,
                              *, tile_b=DEFAULT_TILE_B):
    """pred/target: (B, 52); weights: (136, 52) -> scalar f32 loss."""
    B = pred_blendshapes.shape[0]
    wt = weights.T  # (52, 136), one-time 28 KB wrapper-side transpose

    # Cap the tile at round_up(B, 8) so tiny batches don't over-allocate.
    b_rounded = max(8, ((B + 7) // 8) * 8)
    tb = min(tile_b, b_rounded)
    n_tiles = pl.cdiv(B, tb)

    # Split the batch into per-core partial sums when there is enough work
    # (v7x: 2 TensorCores; on v5e/v6e the second partial just runs sequentially).
    n_parts = 2 if n_tiles >= 2 else 1
    tiles_per_part = pl.cdiv(n_tiles, n_parts)

    inv_n = 1.0 / float(B * LM_DIM)  # divide by TRUE element count

    def batch_block(c, t):
        # Clamp so phantom tiles (odd n_tiles split across 2 parts) stay in
        # bounds; their rows are masked in-kernel via the global row index.
        return (jnp.minimum(c * tiles_per_part + t, n_tiles - 1), 0)

    kernel = functools.partial(_landmark_loss_kernel, true_b=B, tile_b=tb,
                               tiles_per_part=tiles_per_part, inv_n=inv_n)

    partials = pl.pallas_call(
        kernel,
        out_shape=jax.ShapeDtypeStruct((n_parts, 1), jnp.float32),
        grid_spec=pltpu.PrefetchScalarGridSpec(
            num_scalar_prefetch=0,
            grid=(n_parts, tiles_per_part),
            in_specs=[
                pl.BlockSpec((tb, NUM_BLENDSHAPES), batch_block),
                pl.BlockSpec((tb, NUM_BLENDSHAPES), batch_block),
                # Weight tile resident across the whole grid (fetched once).
                pl.BlockSpec((NUM_BLENDSHAPES, LM_DIM), lambda c, t: (0, 0)),
            ],
            # Each partial (core) owns its own (1,1) output slot -> no race.
            out_specs=pl.BlockSpec((1, 1), lambda c, t: (c, 0),
                                   memory_space=pltpu.SMEM),
            scratch_shapes=[pltpu.VMEM((1, LM_DIM), jnp.float32)],
        ),
        compiler_params=pltpu.CompilerParams(
            dimension_semantics=("parallel", "arbitrary"),
            vmem_limit_bytes=32 * 1024 * 1024,
        ),
    )(pred_blendshapes, target_blendshapes, wt)

    return jnp.sum(partials)


def reference_loss(pred, target, weights):
    pred_lm = (pred @ weights.T).reshape(-1, NUM_LANDMARKS, 2)
    tgt_lm = (target @ weights.T).reshape(-1, NUM_LANDMARKS, 2)
    return jnp.mean((pred_lm - tgt_lm) ** 2)


if __name__ == "__main__":
    key = jax.random.PRNGKey(0)
    k_w, k_p, k_t = jax.random.split(key, 3)

    # Deterministic "parameter" init, mirroring torch.randn(136, 52) * 0.01.
    bs_to_landmark_weights = (
        jax.random.normal(k_w, (LM_DIM, NUM_BLENDSHAPES), dtype=jnp.float32) * 0.01
    )

    # Small batch (single-tile, single-partial path).
    B = 8
    pred_blendshapes = jax.random.normal(k_p, (B, NUM_BLENDSHAPES), dtype=jnp.float32)
    target_blendshapes = jax.random.normal(k_t, (B, NUM_BLENDSHAPES), dtype=jnp.float32)

    loss = jax.block_until_ready(
        landmark_consistency_loss(pred_blendshapes, target_blendshapes,
                                  bs_to_landmark_weights)
    )
    ref = reference_loss(pred_blendshapes, target_blendshapes, bs_to_landmark_weights)
    assert jnp.allclose(loss, ref, rtol=1e-5, atol=1e-7), (loss, ref)

    # Multi-tile + two-partial + in-kernel remainder-masking path (even tile count).
    B2 = 1000
    k_p2, k_t2 = jax.random.split(k_p)
    p2 = jax.random.normal(k_p2, (B2, NUM_BLENDSHAPES), dtype=jnp.float32)
    t2 = jax.random.normal(k_t2, (B2, NUM_BLENDSHAPES), dtype=jnp.float32)
    loss2 = jax.block_until_ready(
        landmark_consistency_loss(p2, t2, bs_to_landmark_weights, tile_b=256)
    )
    ref2 = reference_loss(p2, t2, bs_to_landmark_weights)
    assert jnp.allclose(loss2, ref2, rtol=1e-5, atol=1e-7), (loss2, ref2)

    # Odd tile count -> exercises the clamped "phantom" tile (fully masked).
    B3 = 600
    k_p3, k_t3 = jax.random.split(k_t)
    p3 = jax.random.normal(k_p3, (B3, NUM_BLENDSHAPES), dtype=jnp.float32)
    t3 = jax.random.normal(k_t3, (B3, NUM_BLENDSHAPES), dtype=jnp.float32)
    loss3 = jax.block_until_ready(
        landmark_consistency_loss(p3, t3, bs_to_landmark_weights, tile_b=256)
    )
    ref3 = reference_loss(p3, t3, bs_to_landmark_weights)
    assert jnp.allclose(loss3, ref3, rtol=1e-5, atol=1e-7), (loss3, ref3)

    print("KERNEL_OK")
</pallas_src>

<mosaic_0001>
module attributes {stable_mosaic.version = 11 : i64} {
  func.func @_landmark_loss_kernel(%arg0: i32, %arg1: i32, %arg2: memref<8x52xf32, #tpu.memory_space<vmem>>, %arg3: memref<8x52xf32, #tpu.memory_space<vmem>>, %arg4: memref<52x136xf32, #tpu.memory_space<vmem>>, %arg5: memref<1x1xf32, #tpu.memory_space<smem>>, %arg6: memref<1x136xf32, #tpu.memory_space<vmem>>) attributes {dimension_semantics = [#tpu.dimension_semantics<parallel>, #tpu.dimension_semantics<arbitrary>], iteration_bounds = array<i64: 1, 1>, scalar_prefetch = 0 : i64, scratch_operands = 1 : i64, tpu.core_type = #tpu.core_type<tc>, window_params = [{transform_indices = @transform_0, window_bounds = array<i64: 8, 52>}, {transform_indices = @transform_1, window_bounds = array<i64: 8, 52>}, {pipeline_mode = #tpu.pipeline_mode<synchronous>, transform_indices = @transform_2, window_bounds = array<i64: 52, 136>}, {transform_indices = @transform_3, window_bounds = array<i64: 1, 1>}]} {
    %c0_i32 = arith.constant 0 : i32
    %0 = arith.cmpi eq, %arg1, %c0_i32 : i32
    %1 = arith.extui %0 : i1 to i32
    %c0_i32_0 = arith.constant 0 : i32
    %2 = arith.cmpi ne, %1, %c0_i32_0 : i32
    scf.if %2 {
      %cst_15 = arith.constant 0.000000e+00 : f32
      %29 = vector.broadcast %cst_15 : f32 to vector<1x136xf32>
      %c0_16 = arith.constant 0 : index
      %c0_17 = arith.constant 0 : index
      %30 = vector.load %arg6[%c0_16, %c0_17] : memref<1x136xf32, #tpu.memory_space<vmem>>, vector<1x136xf32>
      tpu.vector_store %arg6[%c0_16, %c0_17], %29 {strides = array<i32>} : memref<1x136xf32, #tpu.memory_space<vmem>>, vector<1x136xf32>,
    } else {
    }
    %c1_i32 = arith.constant 1 : i32
    %3 = arith.muli %arg0, %c1_i32 : i32
    %4 = arith.addi %3, %arg1 : i32
    %c8_i32 = arith.constant 8 : i32
    %5 = arith.muli %4, %c8_i32 : i32
    %6 = tpu.iota {dimensions = array<i32: 0>} : vector<8x1xi32>
    %7 = vector.broadcast %5 : i32 to vector<8x1xi32>
    %8 = arith.addi %7, %6 : vector<8x1xi32>
    %c8_i32_1 = arith.constant 8 : i32
    %9 = vector.broadcast %c8_i32_1 : i32 to vector<8x1xi32>
    %10 = arith.cmpi slt, %8, %9 : vector<8x1xi32>
    %c0 = arith.constant 0 : index
    %c0_2 = arith.constant 0 : index
    %11 = vector.load %arg2[%c0, %c0_2] : memref<8x52xf32, #tpu.memory_space<vmem>>, vector<8x52xf32>
    %c0_3 = arith.constant 0 : index
    %c0_4 = arith.constant 0 : index
    %12 = vector.load %arg3[%c0_3, %c0_4] : memref<8x52xf32, #tpu.memory_space<vmem>>, vector<8x52xf32>
    %13 = arith.subf %11, %12 : vector<8x52xf32>
    %cst = arith.constant 0.000000e+00 : f32
    %14 = vector.shape_cast %10 : vector<8x1xi1> to vector<8x1xi1>
    %15 = vector.broadcast %14 : vector<8x1xi1> to vector<8x52xi1>
    %16 = vector.broadcast %cst : f32 to vector<8x52xf32>
    %17 = arith.select %15, %13, %16 : vector<8x52xi1>, vector<8x52xf32>
    %c0_5 = arith.constant 0 : index
    %c0_6 = arith.constant 0 : index
    %18 = vector.load %arg4[%c0_5, %c0_6] : memref<52x136xf32, #tpu.memory_space<vmem>>, vector<52x136xf32>
    %cst_7 = arith.constant dense<0.000000e+00> : vector<8x136xf32>
    %19 = tpu.matmul %17, %18, %cst_7 {dimension_numbers = #tpu.dot_dimension_numbers<[1], [0], [0], [1], [0, 0, 1, 1], [], []>} : vector<8x52xf32>, vector<52x136xf32>, vector<8x136xf32> -> vector<8x136xf32>
    %c0_8 = arith.constant 0 : index
    %c0_9 = arith.constant 0 : index
    %20 = vector.load %arg6[%c0_8, %c0_9] : memref<1x136xf32, #tpu.memory_space<vmem>>, vector<1x136xf32>
    %21 = arith.mulf %19, %19 : vector<8x136xf32>
    %cst_10 = arith.constant dense<0.000000e+00> : vector<136xf32>
    %22 = vector.multi_reduction <add>, %21, %cst_10 [0] : vector<8x136xf32> to vector<136xf32>
    %23 = vector.shape_cast %22 : vector<136xf32> to vector<1x136xf32>
    %24 = arith.addf %20, %23 : vector<1x136xf32>
    %c0_11 = arith.constant 0 : index
    %c0_12 = arith.constant 0 : index
    %25 = vector.load %arg6[%c0_11, %c0_12] : memref<1x136xf32, #tpu.memory_space<vmem>>, vector<1x136xf32>
    tpu.vector_store %arg6[%c0_11, %c0_12], %24 {strides = array<i32>} : memref<1x136xf32, #tpu.memory_space<vmem>>, vector<1x136xf32>,
    %c0_i32_13 = arith.constant 0 : i32
    %26 = arith.cmpi eq, %arg1, %c0_i32_13 : i32
    %27 = arith.extui %26 : i1 to i32
    %c0_i32_14 = arith.constant 0 : i32
    %28 = arith.cmpi ne, %27, %c0_i32_14 : i32
    scf.if %28 {
      %c0_15 = arith.constant 0 : index
      %c0_16 = arith.constant 0 : index
      %29 = vector.load %arg6[%c0_15, %c0_16] : memref<1x136xf32, #tpu.memory_space<vmem>>, vector<1x136xf32>
      %30 = vector.shape_cast %29 : vector<1x136xf32> to vector<1x1x136xf32>
      %cst_17 = arith.constant dense<0.000000e+00> : vector<1xf32>
      %31 = vector.multi_reduction <add>, %30, %cst_17 [1, 2] : vector<1x1x136xf32> to vector<1xf32>
      %32 = vector.shape_cast %31 : vector<1xf32> to vector<1x1x1xf32>
      %33 = vector.extract %32[0, 0, 0] : f32 from vector<1x1x1xf32>
      %cst_18 = arith.constant 9.1911765E-4 : f32
      %34 = arith.mulf %33, %cst_18 : f32
      %c0_19 = arith.constant 0 : index
      %c0_20 = arith.constant 0 : index
      %35 = memref.load %arg5[%c0_19, %c0_20] : memref<1x1xf32, #tpu.memory_space<smem>>
      memref.store %34, %arg5[%c0_19, %c0_20] : memref<1x1xf32, #tpu.memory_space<smem>>
    } else {
    }
    return
  }
  func.func @transform_0(%arg0: i32, %arg1: i32) -> (i32, i32) {
    %c1_i32 = arith.constant 1 : i32
    %0 = arith.muli %arg0, %c1_i32 : i32
    %1 = arith.addi %0, %arg1 : i32
    %c0_i32 = arith.constant 0 : i32
    %2 = arith.minsi %1, %c0_i32 : i32
    %c0_i32_0 = arith.constant 0 : i32
    %c0_i32_1 = arith.constant 0 : i32
    return %2, %c0_i32_0 : i32, i32
  }
  func.func @transform_1(%arg0: i32, %arg1: i32) -> (i32, i32) {
    %c1_i32 = arith.constant 1 : i32
    %0 = arith.muli %arg0, %c1_i32 : i32
    %1 = arith.addi %0, %arg1 : i32
    %c0_i32 = arith.constant 0 : i32
    %2 = arith.minsi %1, %c0_i32 : i32
    %c0_i32_0 = arith.constant 0 : i32
    %c0_i32_1 = arith.constant 0 : i32
    return %2, %c0_i32_0 : i32, i32
  }
  func.func @transform_2(%arg0: i32, %arg1: i32) -> (i32, i32) {
    %c0_i32 = arith.constant 0 : i32
    %c0_i32_0 = arith.constant 0 : i32
    %c0_i32_1 = arith.constant 0 : i32
    return %c0_i32, %c0_i32_0 : i32, i32
  }
  func.func @transform_3(%arg0: i32, %arg1: i32) -> (i32, i32) {
    %c0_i32 = arith.constant 0 : i32
    %c0_i32_0 = arith.constant 0 : i32
    return %arg0, %c0_i32 : i32, i32
  }
}

</mosaic_0001>

<bundles_post_ra>
// kernel: tpu_custom_call.1
= control target key start
LH: loop header
LB: loop body
LE: loop exit
PB: predicated region body
PF: predicated region fallthrough
CT: control target
= control target key end

     0   :  { %8 = vsyncpa [#allocation4], 0  ;;  %s413_s0 = inlined_call_operand.hbm [shape: f32[8,52], index: 0, kind: input, shape index: {}]   ;;  %s414_s1 = inlined_call_operand.hbm [shape: f32[8,52], index: 1, kind: input, shape index: {}]   ;;  %s415_s2 = inlined_call_operand.hbm [shape: f32[52,136], index: 2, kind: input, shape index: {}]   ;;  %s416_s3 = inlined_call_operand.hbm [shape: f32[1,1], index: 3, kind: output, shape index: {}]  }
   0x1   :  { %9 = vsyncpa [#allocation7], 0 }
   0x2   :  { %10 = vsyncpa [#allocation5], 0  ;;  %s365_s12 = smov [#allocation6]   ;;  %s366_s14 = smov [#allocation3]  }
   0x3   :  { %s37_s13 = sshll.u32 %s365_s12, 4  ;;  %s22_s15 = sshll.u32 %s366_s14, 4  ;;  %s38_s13 = int_to_ptr.vmem [resolvable:$true] %s37_s13  ;;  %s23_s15 = int_to_ptr.vmem [resolvable:$true] %s22_s15 }
   0x4   :  { %s299_s16 = scalar_lea.vmem %s38_s13, 128  ;;  %p304_p1 = scmp.lt.s32.totalorder %s38_s13, %s38_s13 }
   0x5   :  { %p300_p0 = scmp.ne.s32.totalorder %s38_s13, %s299_s16  ;;  %p305_p2 = scmp.lt.s32.totalorder %s299_s16, %s299_s16 }
   0x7   :  { %p306_p3 = por %p305_p2, %p304_p1 }
   0x9   :  { %p307_p4 = pnand %p306_p3, %p300_p0 }
   0xb   :  { %310 = shalt.err (!%p307_p4)
}
   0xc   :  { %40 = dma.hbm_to_vmem [thread:$0]  %s414_s1, 128, %s38_s13, [#allocation7]  }
   0xd   :  { %s319_s19 = scalar_lea.vmem %s23_s15, 128  ;;  %p324_p6 = scmp.lt.s32.totalorder %s23_s15, %s23_s15 }
   0xe   :  { %p320_p5 = scmp.ne.s32.totalorder %s23_s15, %s319_s19  ;;  %p325_p7 = scmp.lt.s32.totalorder %s319_s19, %s319_s19 }
  0x10   :  { %p326_p8 = por %p325_p7, %p324_p6 }
  0x12   :  { %p327_p9 = pnand %p326_p8, %p320_p5 }
  0x14   :  { %330 = shalt.err (!%p327_p9)
}
  0x15   :  { %25 = dma.hbm_to_vmem [thread:$0]  %s413_s0, 128, %s23_s15, [#allocation4]  }
  0x16   :  { %s367_s22 = smov [#allocation8]  }
  0x17   :  { %s46_s23 = sshll.u32 %s367_s22, 4  ;;  %s47_s23 = int_to_ptr.vmem [resolvable:$true] %s46_s23 }
  0x18   :  { %s339_s24 = scalar_lea.vmem %s47_s23, 1792  ;;  %p344_p11 = scmp.lt.s32.totalorder %s47_s23, %s47_s23 }
  0x19   :  { %p340_p10 = scmp.ne.s32.totalorder %s47_s23, %s339_s24  ;;  %p345_p12 = scmp.lt.s32.totalorder %s339_s24, %s339_s24 }
  0x1b   :  { %p346_p13 = por %p345_p12, %p344_p11 }
  0x1d   :  { %p347_p0 = pnand %p346_p13, %p340_p10 }
  0x1f   :  { %350 = shalt.err (!%p347_p0)
}
  0x20   :  { %s368_s1 = smov 256   ;;  %s369_s25 = smov 16  }
  0x21   :  { %52 = dma.hbm_to_vmem [thread:$0]  %s415_s2, 1792, %s47_s23, [#allocation7], %s368_s1, %s368_s1, %s369_s25  }
  0x22   :  { %359 = dma.done.wait [#allocation4], 128  }
  0x23   :  { %360 = vsyncadd [#allocation4], 4294967168 }
  0x24   :  { %361 = dma.done.wait [#allocation7], 1920  }
  0x25   :  { %362 = vsyncadd [#allocation7], 4294965376  ;;  %v72_v0 = vlaneseq  ;;  %v370_v1 = vmov 0.0   ;;  %vm108_vm1 = vcmask 1043456   ;;  %v103_v3 = vld [vmem:[#allocation8 + $0x68] sm:$0xf] }
  0x26   :  { %179 = vmatprep.mubr.f32.mxu0 %v370_v1  ;;  %v102_v4 = vld [vmem:[#allocation8 + $0x60] sm:$0xf]  ;;  %v101_v5 = vld [vmem:[#allocation8 + $0x58] sm:$0xff]  ;;  %278 = vmatprep.subr.msk.mxu0 %vm108_vm1, %v103_v3  ;;  %v100_v6 = vld [vmem:[#allocation8 + $0x50] sm:$0xff]  ;;  %vm104_vm2 = vcmask 424960   ;;  %vm195_vm3 = vcmask 64512  }
  0x27   :  { %vm402_vm0 = vcmp.lt.s32.totalorder %v72_v0, 136  ;;  %279 = vmatpush1.msk.msra.mxu0 %vm108_vm1, %v102_v4  ;;  %v99_v7 = vld [vmem:[#allocation8 + $0x48] sm:$0xff]  ;;  %v98_v8 = vld [vmem:[#allocation8 + $0x40] sm:$0xff]  ;;  %v97_v9 = vld [vmem:[#allocation8 + $0x38] sm:$0xff]  ;;  %v371_v30 = vmov 1966171168  }
  0x28   :  { %76 = vst.msk [vmem:[#allocation2] sm:$0x3] %vm402_vm0, %v370_v1  ;;  %135 = vmatprep.subr.mxu0 %v101_v5  ;;  %v96_v10 = vld [vmem:[#allocation8 + $0x30] sm:$0xff]  ;;  %v95_v11 = vld [vmem:[#allocation8 + $0x28] sm:$0xff]  ;;  %v94_v12 = vld [vmem:[#allocation8 + $0x20] sm:$0xff]  ;;  %v207_v31 = vunpack.c.l.s4 %v371_v30  ;;  %v210_v34 = vshrl.u32 %v72_v0, 7 }
  0x29   :  { %136 = vmatpush1.msra.mxu0 %v100_v6  ;;  %v93_v13 = vld [vmem:[#allocation8 + $0x18] sm:$0xff]  ;;  %v84_v14 = vld [vmem:[#allocation3] sm:$0xff]  ;;  %v91_v17 = vld [vmem:[#allocation8 + $0x8] sm:$0xff]  ;;  %vm242_vm4 = vcmask 1040384   ;;  %vm244_vm5 = vcmask 57344   ;;  %s372_s28 = smov [#allocation9]  }
  0x2a   :  { %137 = vmatprep.subr.mxu0 %v99_v7  ;;  %v85_v15 = vld [vmem:[#allocation6] sm:$0xff]  ;;  %v92_v16 = vld [vmem:[#allocation8 + $0x10] sm:$0xff]  ;;  %v90_v18 = vld [vmem:[#allocation8] sm:$0xff]  ;;  %v208_v37 = vunpack.c.0.s8 %v207_v31  ;;  %v234_v47 = vsub.s32 0, %v210_v34  ;;  %v238_v48 = vsub.s32 1, %v210_v34 }
  0x2b   :  { %138 = vmatpush1.msra.mxu0 %v98_v8  ;;  %v86_v19 = vsub.f32 %v84_v14, %v85_v15 }
  0x2c   :  { %139 = vmatprep.subr.mxu0 %v97_v9  ;;  %v211_v41 = vsub.s32 %v208_v37, %v210_v34 }
  0x2d   :  { %140 = vmatpush1.msra.mxu0 %v96_v10 }
  0x2e   :  { %141 = vmatprep.subr.mxu0 %v95_v11 }
  0x2f   :  { %142 = vmatpush1.msra.mxu0 %v94_v12  ;;  %v186_v44 = vld [vmem:[#allocation2] sm:$0x3] }
  0x30   :  { %143 = vmatprep.subr.mxu0 %v93_v13 }
  0x31   :  { %144 = vmatpush1.msra.mxu0 %v92_v16 }
  0x32   :  { %145 = vmatprep.subr.mxu0 %v91_v17 }
  0x33   :  { %146 = vmatpush1.msra.mxu0 %v90_v18 }
  0x34   :  { %280 = vmatmul.mubr.msk.f32.vlgmr.msra.gmra.mxu0 %vm104_vm2, %v86_v19 }
  0xf4   :  { %v181_v20 = vpop.f32.mrf.mxu0 }
  0xf5   :  { %v187_v21 = vmul.f32 %v181_v20, %v181_v20 }
  0xf6   :  { %v183_v22 = vpop.f32.mrf.mxu0 }
  0xf7   :  { %v189_v23 = vrot.slane %v187_v21, 4  ;;  %v188_v24 = vmul.f32 %v183_v22, %v183_v22 }
  0xf9   :  { %v190_v25 = vadd.f32 %v189_v23, %v187_v21  ;;  %v196_v26 = vsel %vm195_vm3, %v188_v24, 0.0 }
  0xfa   :  { %v197_v27 = vrot.slane %v196_v26, 4 }
  0xfb   :  { %v191_v28 = vrot.slane %v190_v25, 2 }
  0xfc   :  { %v198_v29 = vadd.f32 %v197_v27, %v196_v26 }
  0xfd   :  { %v192_v32 = vadd.f32 %v191_v28, %v190_v25 }
  0xfe   :  { %v199_v33 = vrot.slane %v198_v29, 2 }
  0xff   :  { %v193_v35 = vrot.slane %v192_v32, 1 }
 0x100   :  { %v200_v36 = vadd.f32 %v199_v33, %v198_v29 }
 0x101   :  { %v194_v39 = vadd.f32 %v193_v35, %v192_v32 }
 0x102   :  { %v201_v38 = vrot.slane %v200_v36, 1 }
 0x104   :  { %v202_v40 = vadd.f32 %v201_v38, %v200_v36 }
 0x106   :  { %v205_v42 = vcombine.low %v194_v39, %v202_v40 }
 0x108   :  { %v212_v43 = vrot.slane %v205_v42, %v211_v41 }
 0x10a   :  { %v219_v45 = vrot.slane %v212_v43, %v211_v41 }
 0x10c   :  { %v221_v46 = vadd.f32 %v219_v45, %v186_v44 }
 0x10e   :  { %226 = vst.msk [vmem:[#allocation2] sm:$0x3] %vm402_vm0, %v221_v46 }
 0x115   :  { %v230_v49 = vld [vmem:[#allocation2] sm:$0x3] }
 0x116   :  { %v235_v50 = vrot.slane %v230_v49, %v234_v47  ;;  %v239_v51 = vrot.slane %v230_v49, %v238_v48 }
 0x118   :  { %v243_v52 = vsel %vm242_vm4, %v235_v50, 0.0  ;;  %v245_v53 = vsel %vm244_vm5, %v239_v51, 0.0 }
 0x119   :  { %v246_v54 = vadd.f32 %v245_v53, %v243_v52 }
 0x11b   :  { %247 = vadd.xlane.f32.xlu0 %v246_v54 }
 0x1a4   :  { %v248_v55 = vpop.xlane.xlu0 %247 }
 0x1a5   :  { %v249_v56 = vrot.slane %v248_v55, 4 }
 0x1a7   :  { %v250_v57 = vadd.f32 %v249_v56, %v248_v55 }
 0x1a9   :  { %v251_v58 = vrot.slane %v250_v57, 2 }
 0x1ab   :  { %v252_v59 = vadd.f32 %v251_v58, %v250_v57 }
 0x1ad   :  { %v253_v60 = vrot.slane %v252_v59, 1 }
 0x1af   :  { %v254_v61 = vadd.f32 %v253_v60, %v252_v59 }
 0x1b1   :  { %281 = vpush %v254_v61 }
 0x1e2   :  { %s282_s0 = spop %281 }
 0x1e3   :  { %s256_s2 = smul.f32 0.00091911765, %s282_s0 }
 0x1e5   :  { %258 = sst [smem:[#allocation9]] %s256_s2 }
 0x1e6   :  { %266 = dma.smem_to_hbm %s372_s28, 16, %s416_s3, [#allocation5]  }
 0x1e7   :  { %363 = dma.done.wait [#allocation5], 16  }
 0x1e8   :  { %364 = vsyncadd [#allocation5], 4294967280 }
 0x1e9   :  { %270 = sfence }
 0x1ea   :  { %271 = vsyncpa [#allocation4], 1 }
 0x1eb   :  { %272 = vsyncpa [#allocation7], 1 }
 0x1ec   :  { %273 = vsyncpa [#allocation5], 1 }

</bundles_post_ra>
